<compile_context>
chip_gen: v7x
topology: tpu7x:2x2x1
jax: 0.10.0
libtpu: 0.0.40
codegen_flags: <defaults>
</compile_context>

<pallas_src>
import jax
import jax.numpy as jnp
from jax.experimental import pallas as pl
from jax.experimental.pallas import tpu as pltpu


_PACK = 16                 # samples packed per 128-lane row (16 * 8 features)
_LANES = _PACK * 8         # 128
_SUBLANE = 8
_MAX_ROWS = 4096           # rows per grid step: 4096 * 128 * 4 B = 2 MiB input block


def _round_up(v, m):
    return ((v + m - 1) // m) * m


def _block_diag16(w):
    """w: [out, in] (PyTorch layout) -> [16*in, 16*out] block-diagonal of w.T."""
    return jnp.kron(jnp.eye(_PACK, dtype=w.dtype), w.T)


def _mlp_kernel(x_ref, w1_ref, b1_ref, w2_ref, b2_ref, w3_ref, b3_ref, o_ref):
    """One batch tile: x [TR, 128] -> y [TR, 16] (16 independent samples / row).

    The block-diagonal weights keep the 16 sample slots of a row separate, so
    each MXU matmul is exactly the per-sample Linear layer; sigmoid -> EUP.
    """
    hi = jax.lax.Precision.HIGHEST          # true f32 on the MXU
    x = x_ref[...]
    h1 = jax.nn.sigmoid(
        jnp.dot(x, w1_ref[...], precision=hi,
                preferred_element_type=jnp.float32) + b1_ref[...])
    h2 = jax.nn.sigmoid(
        jnp.dot(h1, w2_ref[...], precision=hi,
                preferred_element_type=jnp.float32) + b2_ref[...])
    o_ref[...] = jax.nn.sigmoid(
        jnp.dot(h2, w3_ref[...], precision=hi,
                preferred_element_type=jnp.float32) + b3_ref[...])


def wide_and_deep_forward(x, params):
    """x: [N, 8] float32 -> [N, 1] float32 (same math as the PyTorch module)."""
    w1, b1, w2, b2, w3, b3 = params        # torch layout: w [out, in], b [out]
    n = x.shape[0]

    # --- Zero-copy batch packing: [N, 8] -> [N/16, 128] (16 samples per row). ---
    n16 = max(_round_up(n, _PACK), _PACK * _SUBLANE)   # tiny batches -> 128 samples
    if n16 != n:                                       # pad only when required
        x = jnp.pad(x, ((0, n16 - n), (0, 0)))
    n_rows = n16 // _PACK
    x_packed = x.reshape(n_rows, _LANES)               # row-major reshape: no copy

    # --- Lift tiny layers to 16-way block-diagonal MXU operands (tiny, resident). ---
    w1_bd, w2_bd, w3_bd = _block_diag16(w1), _block_diag16(w2), _block_diag16(w3)
    b1_t = jnp.tile(b1, _PACK)[None, :]                # [1, 96]
    b2_t = jnp.tile(b2, _PACK)[None, :]                # [1, 64]
    b3_t = jnp.tile(b3, _PACK)[None, :]                # [1, 16]

    # --- Row tiling: big blocks, and >=2 grid steps when possible (v7x megacore). ---
    if n_rows <= _SUBLANE:
        tr = n_rows                                    # single block == full dim
    else:
        tr = min(_MAX_ROWS, _round_up(pl.cdiv(n_rows, 2), _SUBLANE))
    grid = (pl.cdiv(n_rows, tr),)

    resident = lambda arr: pl.BlockSpec(arr.shape, lambda i: (0, 0))

    weight_bytes = 4 * sum(int(a.size) for a in (w1_bd, b1_t, w2_bd, b2_t, w3_bd, b3_t))
    cost = pl.CostEstimate(
        flops=2 * n_rows * (_LANES * w1_bd.shape[1]
                            + w1_bd.shape[1] * w2_bd.shape[1]
                            + w2_bd.shape[1] * w3_bd.shape[1]),
        transcendentals=(6 + 4 + 1) * n16,
        bytes_accessed=(_LANES + _PACK) * 4 * n_rows + weight_bytes,
    )

    y_packed = pl.pallas_call(
        _mlp_kernel,
        out_shape=jax.ShapeDtypeStruct((n_rows, _PACK), jnp.float32),
        grid=grid,
        in_specs=[
            pl.BlockSpec((tr, _LANES), lambda i: (i, 0)),  # contiguous batch tile
            resident(w1_bd), resident(b1_t),               # weights/biases stay resident
            resident(w2_bd), resident(b2_t),
            resident(w3_bd), resident(b3_t),
        ],
        out_specs=pl.BlockSpec((tr, _PACK), lambda i: (i, 0)),
        compiler_params=pltpu.CompilerParams(
            dimension_semantics=("parallel",),             # shard steps across v7x TCs
            vmem_limit_bytes=32 * 1024 * 1024,             # v5e scoped default is 16 MiB
        ),
        cost_estimate=cost,
    )(x_packed, w1_bd, b1_t, w2_bd, b2_t, w3_bd, b3_t)

    return y_packed.reshape(n16, 1)[:n]                    # zero-copy unpack + trim


def init_params(key):
    """Deterministic init matching torch.nn.Linear's U(-1/sqrt(fan_in), ...)."""
    def linear(key, fan_in, fan_out):
        kw, kb = jax.random.split(key)
        bound = 1.0 / jnp.sqrt(float(fan_in))
        w = jax.random.uniform(kw, (fan_out, fan_in), jnp.float32, -bound, bound)
        b = jax.random.uniform(kb, (fan_out,), jnp.float32, -bound, bound)
        return w, b

    k1, k2, k3 = jax.random.split(key, 3)
    w1, b1 = linear(k1, 8, 6)
    w2, b2 = linear(k2, 6, 4)
    w3, b3 = linear(k3, 4, 1)
    return w1, b1, w2, b2, w3, b3


if __name__ == "__main__":
    key = jax.random.PRNGKey(0)
    k_params, k_x = jax.random.split(key)

    params = init_params(k_params)
    x = jax.random.normal(k_x, (8, 8), jnp.float32)   # batch=8, in_features=8

    fwd = jax.jit(wide_and_deep_forward)
    y = fwd(x, params)
    jax.block_until_ready(y)

    # Pure-JAX reference of the same math (PyTorch convention), full f32 precision.
    hi = jax.lax.Precision.HIGHEST
    w1, b1, w2, b2, w3, b3 = params
    h1 = jax.nn.sigmoid(jnp.dot(x, w1.T, precision=hi) + b1)
    h2 = jax.nn.sigmoid(jnp.dot(h1, w2.T, precision=hi) + b2)
    y_ref = jax.nn.sigmoid(jnp.dot(h2, w3.T, precision=hi) + b3)

    assert y.shape == (8, 1)
    assert jnp.allclose(y, y_ref, atol=1e-4, rtol=1e-4), float(jnp.max(jnp.abs(y - y_ref)))

    print("KERNEL_OK")
</pallas_src>

<mosaic_0001>
module attributes {stable_mosaic.version = 11 : i64} {
  func.func @_mlp_kernel(%arg0: i32, %arg1: memref<8x128xf32, #tpu.memory_space<vmem>>, %arg2: memref<128x96xf32, #tpu.memory_space<vmem>>, %arg3: memref<1x96xf32, #tpu.memory_space<vmem>>, %arg4: memref<96x64xf32, #tpu.memory_space<vmem>>, %arg5: memref<1x64xf32, #tpu.memory_space<vmem>>, %arg6: memref<64x16xf32, #tpu.memory_space<vmem>>, %arg7: memref<1x16xf32, #tpu.memory_space<vmem>>, %arg8: memref<8x16xf32, #tpu.memory_space<vmem>>) attributes {dimension_semantics = [#tpu.dimension_semantics<parallel>], iteration_bounds = array<i64: 1>, scalar_prefetch = 0 : i64, scratch_operands = 0 : i64, tpu.core_type = #tpu.core_type<tc>, window_params = [{transform_indices = @transform_0, window_bounds = array<i64: 8, 128>}, {pipeline_mode = #tpu.pipeline_mode<synchronous>, transform_indices = @transform_1, window_bounds = array<i64: 128, 96>}, {pipeline_mode = #tpu.pipeline_mode<synchronous>, transform_indices = @transform_2, window_bounds = array<i64: 1, 96>}, {pipeline_mode = #tpu.pipeline_mode<synchronous>, transform_indices = @transform_3, window_bounds = array<i64: 96, 64>}, {pipeline_mode = #tpu.pipeline_mode<synchronous>, transform_indices = @transform_4, window_bounds = array<i64: 1, 64>}, {pipeline_mode = #tpu.pipeline_mode<synchronous>, transform_indices = @transform_5, window_bounds = array<i64: 64, 16>}, {pipeline_mode = #tpu.pipeline_mode<synchronous>, transform_indices = @transform_6, window_bounds = array<i64: 1, 16>}, {transform_indices = @transform_7, window_bounds = array<i64: 8, 16>}]} {
    %c0 = arith.constant 0 : index
    %c0_0 = arith.constant 0 : index
    %0 = vector.load %arg1[%c0, %c0_0] : memref<8x128xf32, #tpu.memory_space<vmem>>, vector<8x128xf32>
    %c0_1 = arith.constant 0 : index
    %c0_2 = arith.constant 0 : index
    %1 = vector.load %arg2[%c0_1, %c0_2] : memref<128x96xf32, #tpu.memory_space<vmem>>, vector<128x96xf32>
    %cst = arith.constant dense<0.000000e+00> : vector<8x96xf32>
    %2 = tpu.matmul %0, %1, %cst {dimension_numbers = #tpu.dot_dimension_numbers<[1], [0], [0], [1], [0, 0, 1, 1], [], []>, precision = #tpu.contract_precision<fp32>} : vector<8x128xf32>, vector<128x96xf32>, vector<8x96xf32> -> vector<8x96xf32>
    %c0_3 = arith.constant 0 : index
    %c0_4 = arith.constant 0 : index
    %3 = vector.load %arg3[%c0_3, %c0_4] : memref<1x96xf32, #tpu.memory_space<vmem>>, vector<1x96xf32>
    %4 = vector.broadcast %3 : vector<1x96xf32> to vector<8x96xf32>
    %5 = arith.addf %2, %4 : vector<8x96xf32>
    %6 = arith.negf %5 : vector<8x96xf32>
    %7 = math.exp %6 : vector<8x96xf32>
    %cst_5 = arith.constant 1.000000e+00 : f32
    %8 = vector.broadcast %cst_5 : f32 to vector<8x96xf32>
    %9 = arith.addf %8, %7 : vector<8x96xf32>
    %10 = arith.divf %8, %9 : vector<8x96xf32>
    %c0_6 = arith.constant 0 : index
    %c0_7 = arith.constant 0 : index
    %11 = vector.load %arg4[%c0_6, %c0_7] : memref<96x64xf32, #tpu.memory_space<vmem>>, vector<96x64xf32>
    %cst_8 = arith.constant dense<0.000000e+00> : vector<8x64xf32>
    %12 = tpu.matmul %10, %11, %cst_8 {dimension_numbers = #tpu.dot_dimension_numbers<[1], [0], [0], [1], [0, 0, 1, 1], [], []>, precision = #tpu.contract_precision<fp32>} : vector<8x96xf32>, vector<96x64xf32>, vector<8x64xf32> -> vector<8x64xf32>
    %c0_9 = arith.constant 0 : index
    %c0_10 = arith.constant 0 : index
    %13 = vector.load %arg5[%c0_9, %c0_10] : memref<1x64xf32, #tpu.memory_space<vmem>>, vector<1x64xf32>
    %14 = vector.broadcast %13 : vector<1x64xf32> to vector<8x64xf32>
    %15 = arith.addf %12, %14 : vector<8x64xf32>
    %16 = arith.negf %15 : vector<8x64xf32>
    %17 = math.exp %16 : vector<8x64xf32>
    %cst_11 = arith.constant 1.000000e+00 : f32
    %18 = vector.broadcast %cst_11 : f32 to vector<8x64xf32>
    %19 = arith.addf %18, %17 : vector<8x64xf32>
    %20 = arith.divf %18, %19 : vector<8x64xf32>
    %c0_12 = arith.constant 0 : index
    %c0_13 = arith.constant 0 : index
    %21 = vector.load %arg6[%c0_12, %c0_13] : memref<64x16xf32, #tpu.memory_space<vmem>>, vector<64x16xf32>
    %cst_14 = arith.constant dense<0.000000e+00> : vector<8x16xf32>
    %22 = tpu.matmul %20, %21, %cst_14 {dimension_numbers = #tpu.dot_dimension_numbers<[1], [0], [0], [1], [0, 0, 1, 1], [], []>, precision = #tpu.contract_precision<fp32>} : vector<8x64xf32>, vector<64x16xf32>, vector<8x16xf32> -> vector<8x16xf32>
    %c0_15 = arith.constant 0 : index
    %c0_16 = arith.constant 0 : index
    %23 = vector.load %arg7[%c0_15, %c0_16] : memref<1x16xf32, #tpu.memory_space<vmem>>, vector<1x16xf32>
    %24 = vector.broadcast %23 : vector<1x16xf32> to vector<8x16xf32>
    %25 = arith.addf %22, %24 : vector<8x16xf32>
    %26 = arith.negf %25 : vector<8x16xf32>
    %27 = math.exp %26 : vector<8x16xf32>
    %cst_17 = arith.constant 1.000000e+00 : f32
    %28 = vector.broadcast %cst_17 : f32 to vector<8x16xf32>
    %29 = arith.addf %28, %27 : vector<8x16xf32>
    %30 = arith.divf %28, %29 : vector<8x16xf32>
    %c0_18 = arith.constant 0 : index
    %c0_19 = arith.constant 0 : index
    %31 = vector.load %arg8[%c0_18, %c0_19] : memref<8x16xf32, #tpu.memory_space<vmem>>, vector<8x16xf32>
    tpu.vector_store %arg8[%c0_18, %c0_19], %30 {strides = array<i32>} : memref<8x16xf32, #tpu.memory_space<vmem>>, vector<8x16xf32>,
    return
  }
  func.func @transform_0(%arg0: i32) -> (i32, i32) {
    %c0_i32 = arith.constant 0 : i32
    %c0_i32_0 = arith.constant 0 : i32
    return %arg0, %c0_i32 : i32, i32
  }
  func.func @transform_1(%arg0: i32) -> (i32, i32) {
    %c0_i32 = arith.constant 0 : i32
    %c0_i32_0 = arith.constant 0 : i32
    %c0_i32_1 = arith.constant 0 : i32
    return %c0_i32, %c0_i32_0 : i32, i32
  }
  func.func @transform_2(%arg0: i32) -> (i32, i32) {
    %c0_i32 = arith.constant 0 : i32
    %c0_i32_0 = arith.constant 0 : i32
    %c0_i32_1 = arith.constant 0 : i32
    return %c0_i32, %c0_i32_0 : i32, i32
  }
  func.func @transform_3(%arg0: i32) -> (i32, i32) {
    %c0_i32 = arith.constant 0 : i32
    %c0_i32_0 = arith.constant 0 : i32
    %c0_i32_1 = arith.constant 0 : i32
    return %c0_i32, %c0_i32_0 : i32, i32
  }
  func.func @transform_4(%arg0: i32) -> (i32, i32) {
    %c0_i32 = arith.constant 0 : i32
    %c0_i32_0 = arith.constant 0 : i32
    %c0_i32_1 = arith.constant 0 : i32
    return %c0_i32, %c0_i32_0 : i32, i32
  }
  func.func @transform_5(%arg0: i32) -> (i32, i32) {
    %c0_i32 = arith.constant 0 : i32
    %c0_i32_0 = arith.constant 0 : i32
    %c0_i32_1 = arith.constant 0 : i32
    return %c0_i32, %c0_i32_0 : i32, i32
  }
  func.func @transform_6(%arg0: i32) -> (i32, i32) {
    %c0_i32 = arith.constant 0 : i32
    %c0_i32_0 = arith.constant 0 : i32
    %c0_i32_1 = arith.constant 0 : i32
    return %c0_i32, %c0_i32_0 : i32, i32
  }
  func.func @transform_7(%arg0: i32) -> (i32, i32) {
    %c0_i32 = arith.constant 0 : i32
    %c0_i32_0 = arith.constant 0 : i32
    return %arg0, %c0_i32 : i32, i32
  }
}

</mosaic_0001>

<bundles_post_ra>
// kernel: tile.18
= control target key start
LH: loop header
LB: loop body
LE: loop exit
PB: predicated region body
PF: predicated region fallthrough
CT: control target
= control target key end

     0   :  { %s28_s0 = inlined_call_operand.vmem [shape: f32[6], index: 0, kind: input, shape index: {}]   ;;  %s29_s1 = inlined_call_operand.vmem [shape: f32[16,6], index: 1, kind: output, shape index: {}]  }
   0x1   :  { %v4_v0 = vld [vmem:[%s28_s0] ss:$0 sm:$0xff] }
   0x2   :  { %5 = vst [vmem:[%s29_s1] sm:$0xff] %v4_v0  ;;  %8 = vst [vmem:[%s29_s1 + $0x8] sm:$0xff] %v4_v0 }

// kernel: tile.19
= control target key start
LH: loop header
LB: loop body
LE: loop exit
PB: predicated region body
PF: predicated region fallthrough
CT: control target
= control target key end

     0   :  { %s131_s10 = smov 90   ;;  %s132_s11 = smov 78   ;;  %vm3_vm0 = vcmask 48128   ;;  %vm9_vm1 = vcmask 786128   ;;  %vm15_vm2 = vcmask 736928   ;;  %vm21_vm3 = vcmask 687728   ;;  %s207_s0 = inlined_call_operand.vmem [shape: f32[16,6], index: 0, kind: input, shape index: {}]   ;;  %s208_s1 = inlined_call_operand.vmem [shape: f32[1,96], index: 1, kind: output, shape index: {}]  }
   0x1   :  { %v101_v0 = vld [vmem:[%s207_s0 + $0xf] sm:$0x1]   ;;  %v103_v1 = vld [vmem:[%s207_s0 + $0xd] sm:$0x1]   ;;  %v102_v2 = vld [vmem:[%s207_s0 + $0xe] sm:$0x1]  }
   0x2   :  { %7 = vrot.lane.b32.xlu0 %v101_v0, %s131_s10  ;;  %19 = vrot.lane.b32.xlu1 %v103_v1, %s132_s11  ;;  %v104_v3 = vld [vmem:[%s207_s0 + $0xc] sm:$0x1]   ;;  %s133_s16 = smov 84   ;;  %s134_s17 = smov 72   ;;  %v105_v4 = vld [vmem:[%s207_s0 + $0xb] sm:$0x1]  }
   0x3   :  { %v106_v5 = vld [vmem:[%s207_s0 + $0xa] sm:$0x1]   ;;  %v2_v6 = vld [vmem:[%s207_s0] sm:$0x1]   ;;  %s135_s24 = smov 66   ;;  %s136_s25 = smov 60  }
   0x4   :  { %4 = vst.msk [vmem:[#allocation0] sm:$0x1] %vm3_vm0, %v2_v6   ;;  %v107_v7 = vld [vmem:[%s207_s0 + $0x9] sm:$0x1]   ;;  %v108_v8 = vld [vmem:[%s207_s0 + $0x8] sm:$0x1]  }
   0x5   :  { %s137_s30 = smov 54   ;;  %s138_s2 = smov 48   ;;  %v109_v9 = vld [vmem:[%s207_s0 + $0x7] sm:$0x1]   ;;  %v110_v10 = vld [vmem:[%s207_s0 + $0x6] sm:$0x1]  }
   0x6   :  { %13 = vrot.lane.b32.xlu0 %v102_v2, %s133_s16  ;;  %25 = vrot.lane.b32.xlu1 %v104_v3, %s134_s17  ;;  %s139_s7 = smov 42   ;;  %s140_s8 = smov 36   ;;  %v111_v11 = vld [vmem:[%s207_s0 + $0x5] sm:$0x1]   ;;  %v112_v12 = vld [vmem:[%s207_s0 + $0x4] sm:$0x1]  }
   0x7   :  { %s141_s13 = smov 30   ;;  %s142_s14 = smov 24   ;;  %v113_v13 = vld [vmem:[%s207_s0 + $0x3] sm:$0x1]   ;;  %v114_v14 = vld [vmem:[%s207_s0 + $0x2] sm:$0x1]  }
   0x8   :  { %s143_s19 = smov 18   ;;  %s144_s20 = smov 12   ;;  %v115_v15 = vld [vmem:[%s207_s0 + $0x1] sm:$0x1]   ;;  %vm27_vm4 = vcmask 638528   ;;  %vm33_vm5 = vcmask 589328  }
   0x9   :  { %s145_s0 = smov 6   ;;  %vm39_vm6 = vcmask 540128   ;;  %vm45_vm7 = vcmask 490928   ;;  %vm51_vm8 = vcmask 441728   ;;  %vm57_vm9 = vcmask 392528  }
   0xa   :  { %31 = vrot.lane.b32.xlu0 %v105_v4, %s135_s24  ;;  %37 = vrot.lane.b32.xlu1 %v106_v5, %s136_s25  ;;  %vm63_vm10 = vcmask 343328   ;;  %vm69_vm11 = vcmask 294128   ;;  %vm75_vm12 = vcmask 244928   ;;  %vm81_vm13 = vcmask 195728  }
   0xb   :  { %vm87_vm14 = vcmask 146528   ;;  %vm93_vm15 = vcmask 97328  }
   0xe   :  { %43 = vrot.lane.b32.xlu0 %v107_v7, %s137_s30  ;;  %49 = vrot.lane.b32.xlu1 %v108_v8, %s138_s2 }
  0x12   :  { %55 = vrot.lane.b32.xlu0 %v109_v9, %s139_s7  ;;  %61 = vrot.lane.b32.xlu1 %v110_v10, %s140_s8 }
  0x16   :  { %67 = vrot.lane.b32.xlu0 %v111_v11, %s141_s13  ;;  %73 = vrot.lane.b32.xlu1 %v112_v12, %s142_s14 }
  0x1a   :  { %79 = vrot.lane.b32.xlu0 %v113_v13, %s143_s19  ;;  %85 = vrot.lane.b32.xlu1 %v114_v14, %s144_s20 }
  0x1e   :  { %91 = vrot.lane.b32.xlu0 %v115_v15, %s145_s0 }
  0x74   :  { %v8_v16 = vpop.permute.xlu0 %7   ;;  %v20_v17 = vpop.permute.xlu1 %19  }
  0x75   :  { %10 = vst.msk [vmem:[#allocation0] sm:$0x1] %vm9_vm1, %v8_v16  }
  0x78   :  { %v14_v18 = vpop.permute.xlu0 %13   ;;  %v26_v19 = vpop.permute.xlu1 %25  }
  0x79   :  { %16 = vst.msk [vmem:[#allocation0] sm:$0x1] %vm15_vm2, %v14_v18  }
  0x7a   :  { %22 = vst.msk [vmem:[#allocation0] sm:$0x1] %vm21_vm3, %v20_v17  }
  0x7b   :  { %28 = vst.msk [vmem:[#allocation0] sm:$0x1] %vm27_vm4, %v26_v19  }
  0x7c   :  { %v32_v20 = vpop.permute.xlu0 %31   ;;  %v38_v21 = vpop.permute.xlu1 %37  }
  0x7d   :  { %34 = vst.msk [vmem:[#allocation0] sm:$0x1] %vm33_vm5, %v32_v20  }
  0x7e   :  { %40 = vst.msk [vmem:[#allocation0] sm:$0x1] %vm39_vm6, %v38_v21  }
  0x80   :  { %v44_v22 = vpop.permute.xlu0 %43   ;;  %v50_v23 = vpop.permute.xlu1 %49  }
  0x81   :  { %46 = vst.msk [vmem:[#allocation0] sm:$0x1] %vm45_vm7, %v44_v22  }
  0x82   :  { %52 = vst.msk [vmem:[#allocation0] sm:$0x1] %vm51_vm8, %v50_v23  }
  0x84   :  { %v56_v24 = vpop.permute.xlu0 %55   ;;  %v62_v25 = vpop.permute.xlu1 %61  }
  0x85   :  { %58 = vst.msk [vmem:[#allocation0] sm:$0x1] %vm57_vm9, %v56_v24  }
  0x86   :  { %64 = vst.msk [vmem:[#allocation0] sm:$0x1] %vm63_vm10, %v62_v25  }
  0x88   :  { %v68_v26 = vpop.permute.xlu0 %67   ;;  %v74_v27 = vpop.permute.xlu1 %73  }
  0x89   :  { %70 = vst.msk [vmem:[#allocation0] sm:$0x1] %vm69_vm11, %v68_v26  }
  0x8a   :  { %76 = vst.msk [vmem:[#allocation0] sm:$0x1] %vm75_vm12, %v74_v27  }
  0x8c   :  { %v80_v28 = vpop.permute.xlu0 %79   ;;  %v86_v29 = vpop.permute.xlu1 %85  }
  0x8d   :  { %82 = vst.msk [vmem:[#allocation0] sm:$0x1] %vm81_vm13, %v80_v28  }
  0x8e   :  { %88 = vst.msk [vmem:[#allocation0] sm:$0x1] %vm87_vm14, %v86_v29  }
  0x90   :  { %v92_v30 = vpop.permute.xlu0 %91  }
  0x91   :  { %94 = vst.msk [vmem:[#allocation0] sm:$0x1] %vm93_vm15, %v92_v30  }
  0x98   :  { %v98_v31 = vld [vmem:[#allocation0] sm:$0x1] }
  0x99   :  { %100 = vst [vmem:[%s208_s1] sm:$0x1] %v98_v31 }

// kernel: tile.24
= control target key start
LH: loop header
LB: loop body
LE: loop exit
PB: predicated region body
PF: predicated region fallthrough
CT: control target
= control target key end

     0   :  { %s131_s10 = smov 60   ;;  %s132_s11 = smov 52   ;;  %vm3_vm0 = vcmask 31744   ;;  %vm9_vm1 = vcmask 523744   ;;  %vm15_vm2 = vcmask 490944   ;;  %vm21_vm3 = vcmask 458144   ;;  %s207_s0 = inlined_call_operand.vmem [shape: f32[16,4], index: 0, kind: input, shape index: {}]   ;;  %s208_s1 = inlined_call_operand.vmem [shape: f32[1,64], index: 1, kind: output, shape index: {}]  }
   0x1   :  { %v101_v0 = vld [vmem:[%s207_s0 + $0xf] sm:$0x1]   ;;  %v103_v1 = vld [vmem:[%s207_s0 + $0xd] sm:$0x1]   ;;  %v102_v2 = vld [vmem:[%s207_s0 + $0xe] sm:$0x1]  }
   0x2   :  { %7 = vrot.lane.b32.xlu0 %v101_v0, %s131_s10  ;;  %19 = vrot.lane.b32.xlu1 %v103_v1, %s132_s11  ;;  %v104_v3 = vld [vmem:[%s207_s0 + $0xc] sm:$0x1]   ;;  %s133_s16 = smov 56   ;;  %s134_s17 = smov 48   ;;  %v105_v4 = vld [vmem:[%s207_s0 + $0xb] sm:$0x1]  }
   0x3   :  { %v106_v5 = vld [vmem:[%s207_s0 + $0xa] sm:$0x1]   ;;  %v2_v6 = vld [vmem:[%s207_s0] sm:$0x1]   ;;  %s135_s24 = smov 44   ;;  %s136_s25 = smov 40  }
   0x4   :  { %4 = vst.msk [vmem:[#allocation0] sm:$0x1] %vm3_vm0, %v2_v6   ;;  %v107_v7 = vld [vmem:[%s207_s0 + $0x9] sm:$0x1]   ;;  %v108_v8 = vld [vmem:[%s207_s0 + $0x8] sm:$0x1]  }
   0x5   :  { %s137_s30 = smov 36   ;;  %s138_s2 = smov 32   ;;  %v109_v9 = vld [vmem:[%s207_s0 + $0x7] sm:$0x1]   ;;  %v110_v10 = vld [vmem:[%s207_s0 + $0x6] sm:$0x1]  }
   0x6   :  { %13 = vrot.lane.b32.xlu0 %v102_v2, %s133_s16  ;;  %25 = vrot.lane.b32.xlu1 %v104_v3, %s134_s17  ;;  %s139_s7 = smov 28   ;;  %s140_s8 = smov 24   ;;  %v111_v11 = vld [vmem:[%s207_s0 + $0x5] sm:$0x1]   ;;  %v112_v12 = vld [vmem:[%s207_s0 + $0x4] sm:$0x1]  }
   0x7   :  { %s141_s13 = smov 20   ;;  %s142_s14 = smov 16   ;;  %v113_v13 = vld [vmem:[%s207_s0 + $0x3] sm:$0x1]   ;;  %v114_v14 = vld [vmem:[%s207_s0 + $0x2] sm:$0x1]  }
   0x8   :  { %s143_s19 = smov 12   ;;  %s144_s20 = smov 8   ;;  %v115_v15 = vld [vmem:[%s207_s0 + $0x1] sm:$0x1]   ;;  %vm27_vm4 = vcmask 425344   ;;  %vm33_vm5 = vcmask 392544  }
   0x9   :  { %s145_s0 = smov 4   ;;  %vm39_vm6 = vcmask 359744   ;;  %vm45_vm7 = vcmask 326944   ;;  %vm51_vm8 = vcmask 294144   ;;  %vm57_vm9 = vcmask 261344  }
   0xa   :  { %31 = vrot.lane.b32.xlu0 %v105_v4, %s135_s24  ;;  %37 = vrot.lane.b32.xlu1 %v106_v5, %s136_s25  ;;  %vm63_vm10 = vcmask 228544   ;;  %vm69_vm11 = vcmask 195744   ;;  %vm75_vm12 = vcmask 162944   ;;  %vm81_vm13 = vcmask 130144  }
   0xb   :  { %vm87_vm14 = vcmask 97344   ;;  %vm93_vm15 = vcmask 64544  }
   0xe   :  { %43 = vrot.lane.b32.xlu0 %v107_v7, %s137_s30  ;;  %49 = vrot.lane.b32.xlu1 %v108_v8, %s138_s2 }
  0x12   :  { %55 = vrot.lane.b32.xlu0 %v109_v9, %s139_s7  ;;  %61 = vrot.lane.b32.xlu1 %v110_v10, %s140_s8 }
  0x16   :  { %67 = vrot.lane.b32.xlu0 %v111_v11, %s141_s13  ;;  %73 = vrot.lane.b32.xlu1 %v112_v12, %s142_s14 }
  0x1a   :  { %79 = vrot.lane.b32.xlu0 %v113_v13, %s143_s19  ;;  %85 = vrot.lane.b32.xlu1 %v114_v14, %s144_s20 }
  0x1e   :  { %91 = vrot.lane.b32.xlu0 %v115_v15, %s145_s0 }
  0x74   :  { %v8_v16 = vpop.permute.xlu0 %7   ;;  %v20_v17 = vpop.permute.xlu1 %19  }
  0x75   :  { %10 = vst.msk [vmem:[#allocation0] sm:$0x1] %vm9_vm1, %v8_v16  }
  0x78   :  { %v14_v18 = vpop.permute.xlu0 %13   ;;  %v26_v19 = vpop.permute.xlu1 %25  }
  0x79   :  { %16 = vst.msk [vmem:[#allocation0] sm:$0x1] %vm15_vm2, %v14_v18  }
  0x7a   :  { %22 = vst.msk [vmem:[#allocation0] sm:$0x1] %vm21_vm3, %v20_v17  }
  0x7b   :  { %28 = vst.msk [vmem:[#allocation0] sm:$0x1] %vm27_vm4, %v26_v19  }
  0x7c   :  { %v32_v20 = vpop.permute.xlu0 %31   ;;  %v38_v21 = vpop.permute.xlu1 %37  }
  0x7d   :  { %34 = vst.msk [vmem:[#allocation0] sm:$0x1] %vm33_vm5, %v32_v20  }
  0x7e   :  { %40 = vst.msk [vmem:[#allocation0] sm:$0x1] %vm39_vm6, %v38_v21  }
  0x80   :  { %v44_v22 = vpop.permute.xlu0 %43   ;;  %v50_v23 = vpop.permute.xlu1 %49  }
  0x81   :  { %46 = vst.msk [vmem:[#allocation0] sm:$0x1] %vm45_vm7, %v44_v22  }
  0x82   :  { %52 = vst.msk [vmem:[#allocation0] sm:$0x1] %vm51_vm8, %v50_v23  }
  0x84   :  { %v56_v24 = vpop.permute.xlu0 %55   ;;  %v62_v25 = vpop.permute.xlu1 %61  }
  0x85   :  { %58 = vst.msk [vmem:[#allocation0] sm:$0x1] %vm57_vm9, %v56_v24  }
  0x86   :  { %64 = vst.msk [vmem:[#allocation0] sm:$0x1] %vm63_vm10, %v62_v25  }
  0x88   :  { %v68_v26 = vpop.permute.xlu0 %67   ;;  %v74_v27 = vpop.permute.xlu1 %73  }
  0x89   :  { %70 = vst.msk [vmem:[#allocation0] sm:$0x1] %vm69_vm11, %v68_v26  }
  0x8a   :  { %76 = vst.msk [vmem:[#allocation0] sm:$0x1] %vm75_vm12, %v74_v27  }
  0x8c   :  { %v80_v28 = vpop.permute.xlu0 %79   ;;  %v86_v29 = vpop.permute.xlu1 %85  }
  0x8d   :  { %82 = vst.msk [vmem:[#allocation0] sm:$0x1] %vm81_vm13, %v80_v28  }
  0x8e   :  { %88 = vst.msk [vmem:[#allocation0] sm:$0x1] %vm87_vm14, %v86_v29  }
  0x90   :  { %v92_v30 = vpop.permute.xlu0 %91  }
  0x91   :  { %94 = vst.msk [vmem:[#allocation0] sm:$0x1] %vm93_vm15, %v92_v30  }
  0x98   :  { %v98_v31 = vld [vmem:[#allocation0] sm:$0x1] }
  0x99   :  { %100 = vst [vmem:[%s208_s1] sm:$0x1] %v98_v31 }

// kernel: wide_and_deep_forward.1
= control target key start
LH: loop header
LB: loop body
LE: loop exit
PB: predicated region body
PF: predicated region fallthrough
CT: control target
= control target key end

     0   :  { %v2980_v0 = vmov 0.0|0.0   ;;  %vm2981_vm0 = vmmov 0   ;;  %v2982_v4 = vmov 0.0   ;;  %vm716_vm1 = vcmask 785408   ;;  %s3681_s1 = inlined_call_operand.vmem [shape: f32[128,96], index: 1, kind: input, shape index: {}]   ;;  %s3682_s0 = inlined_call_operand.vmem [shape: f32[8,128], index: 0, kind: input, shape index: {}]   ;;  %s3683_s3 = inlined_call_operand.vmem [shape: f32[96,64], index: 3, kind: input, shape index: {}]   ;;  %s3684_s2 = inlined_call_operand.vmem [shape: f32[1,96], index: 2, kind: input, shape index: {}]   ;;  %s3685_s5 = inlined_call_operand.vmem [shape: f32[64,16], index: 5, kind: input, shape index: {}]   ;;  %s3686_s4 = inlined_call_operand.vmem [shape: f32[1,64], index: 4, kind: input, shape index: {}]   ;;  %s3687_s6 = inlined_call_operand.vmem [shape: f32[1,16], index: 6, kind: input, shape index: {}]   ;;  %s3688_s7 = inlined_call_operand.vmem [shape: f32[8,16], index: 7, kind: output, shape index: {}]  }
   0x1   :  { %2609 = vmatprep.subr.bf16.mxu0 %v2980_v0  ;;  %v27_v1 = vld [vmem:[%s3681_s1] sm:$0xff]  ;;  %v28_v2 = vld [vmem:[%s3681_s1 + $0x8] sm:$0xff]  ;;  %v29_v3 = vld [vmem:[%s3681_s1 + $0x10] sm:$0xff]  ;;  %2155 = vmatprep.mubr.msk.f32.mxu0 %vm2981_vm0, %v2982_v4  ;;  %vm1330_vm2 = vcmask 523264   ;;  %vm1877_vm3 = vcmask 130048  }
   0x2   :  { %v51_v5 = vand.u32 4294901760, %v27_v1  ;;  %v54_v6 = vand.u32 4294901760, %v28_v2  ;;  %v30_v7 = vld [vmem:[%s3681_s1 + $0x18] sm:$0xff]  ;;  %v57_v8 = vand.u32 4294901760, %v29_v3  ;;  %2771 = vmatprep.subr.bf16.mxu1 %v2980_v0  ;;  %2384 = vmatprep.mubr.msk.f32.mxu1 %vm2981_vm0, %v2982_v4  ;;  %v31_v10 = vld [vmem:[%s3681_s1 + $0x20] sm:$0xff]  ;;  %v32_v11 = vld [vmem:[%s3681_s1 + $0x28] sm:$0xff] }
   0x3   :  { %v60_v9 = vand.u32 4294901760, %v30_v7  ;;  %v63_v14 = vand.u32 4294901760, %v31_v10  ;;  %v66_v15 = vand.u32 4294901760, %v32_v11  ;;  %v33_v16 = vld [vmem:[%s3681_s1 + $0x30] sm:$0xff]  ;;  %v34_v17 = vld [vmem:[%s3681_s1 + $0x38] sm:$0xff]  ;;  %v35_v21 = vld [vmem:[%s3681_s1 + $0x40] sm:$0xff] }
   0x4   :  { %v3047_v12 = vpack.c.bf16 %v54_v6, %v51_v5  ;;  %v69_v19 = vand.u32 4294901760, %v33_v16  ;;  %v72_v20 = vand.u32 4294901760, %v34_v17  ;;  %v36_v22 = vld [vmem:[%s3681_s1 + $0x48] sm:$0xff]  ;;  %v26_v23 = vld [vmem:[%s3682_s0] sm:$0xff]  ;;  %v3072_v24 = vsub.f32 %v27_v1, %v51_v5  ;;  %v37_v29 = vld [vmem:[%s3681_s1 + $0x50] sm:$0xff] }
   0x5   :  { %v3050_v13 = vpack.c.bf16 %v60_v9, %v57_v8  ;;  %v3060_v18 = vpack.c.bf16 %v66_v15, %v63_v14  ;;  %v3074_v25 = vsub.f32 %v28_v2, %v54_v6  ;;  %v75_v27 = vand.u32 4294901760, %v35_v21  ;;  %v38_v30 = vld [vmem:[%s3681_s1 + $0x58] sm:$0xff]  ;;  %v39_v32 = vld [vmem:[%s3681_s1 + $0x60] sm:$0xff]  ;;  %v40_v35 = vld [vmem:[%s3681_s1 + $0x68] sm:$0xff] }
   0x6   :  { %2611 = vmatpush3.bf16.msra.mxu0 %v3047_v12  ;;  %v3077_v26 = vpack.c.bf16 %v72_v20, %v69_v19  ;;  %v78_v28 = vand.u32 4294901760, %v36_v22  ;;  %v3086_v31 = vand.u32 4294901760, %v26_v23  ;;  %v3091_v33 = vsub.f32 %v29_v3, %v57_v8  ;;  %v41_v36 = vld [vmem:[%s3681_s1 + $0x70] sm:$0xff]  ;;  %v42_v37 = vld [vmem:[%s3681_s1 + $0x78] sm:$0xff] }
   0x7   :  { %2612 = vmatprep.subr.bf16.mxu0 %v2980_v0  ;;  %v81_v34 = vand.u32 4294901760, %v37_v29  ;;  %v84_v39 = vand.u32 4294901760, %v38_v30  ;;  %v144_v40 = vand.u32 4294901760, %v3072_v24  ;;  %v151_v41 = vand.u32 4294901760, %v3074_v25 }
   0x8   :  { %v3103_v38 = vpack.c.bf16 %v78_v28, %v75_v27  ;;  %v3107_v42 = vsub.f32 %v30_v7, %v60_v9  ;;  %v3109_v43 = vsub.f32 %v31_v10, %v63_v14  ;;  %v3111_v44 = vsub.f32 %v32_v11, %v66_v15 }
   0x9   :  { %v3115_v45 = vsub.f32 %v26_v23, %v3086_v31  ;;  %v87_v46 = vand.u32 4294901760, %v39_v32  ;;  %v90_v47 = vand.u32 4294901760, %v40_v35  ;;  %v93_v48 = vand.u32 4294901760, %v41_v36 }
   0xa   :  { %2614 = vmatpush3.bf16.msra.mxu0 %v3050_v13  ;;  %v96_v49 = vand.u32 4294901760, %v42_v37  ;;  %v3117_v50 = vsub.f32 %v33_v16, %v69_v19  ;;  %v3119_v51 = vsub.f32 %v34_v17, %v72_v20  ;;  %v3121_v52 = vsub.f32 %v35_v21, %v75_v27 }
   0xb   :  { %2615 = vmatprep.subr.bf16.mxu0 %v2980_v0  ;;  %v158_v53 = vand.u32 4294901760, %v3091_v33  ;;  %v3125_v54 = vsub.f32 %v36_v22, %v78_v28  ;;  %v3127_v55 = vpack.c.bf16 %v84_v39, %v81_v34  ;;  %v145_v56 = vsub.f32 %v3072_v24, %v144_v40 }
   0xc   :  { %v152_v57 = vsub.f32 %v3074_v25, %v151_v41  ;;  %v3132_v58 = vsub.f32 %v37_v29, %v81_v34  ;;  %v3134_v59 = vsub.f32 %v38_v30, %v84_v39  ;;  %v3136_v60 = vsub.f32 %v39_v32, %v87_v46 }
   0xd   :  { %v133_v61 = vand.u32 4294901760, %v3115_v45  ;;  %v3139_v62 = vpack.c.bf16 %v90_v47, %v87_v46  ;;  %v3141_v63 = vsub.f32 %v40_v35, %v90_v47  ;;  %v3143_v1 = vpack.c.bf16 %v96_v49, %v93_v48 }
   0xe   :  { %2617 = vmatpush3.bf16.msra.mxu0 %v3060_v18  ;;  %v3145_v2 = vsub.f32 %v41_v36, %v93_v48  ;;  %v3147_v3 = vsub.f32 %v42_v37, %v96_v49  ;;  %v159_v5 = vsub.f32 %v3091_v33, %v158_v53  ;;  %v165_v6 = vand.u32 4294901760, %v3107_v42 }
   0xf   :  { %2618 = vmatprep.subr.bf16.mxu0 %v2980_v0  ;;  %v172_v7 = vand.u32 4294901760, %v3109_v43  ;;  %v146_v8 = vand.u32 4294901760, %v145_v56  ;;  %v153_v9 = vand.u32 4294901760, %v152_v57  ;;  %v179_v10 = vand.u32 4294901760, %v3111_v44 }
  0x10   :  { %v186_v11 = vand.u32 4294901760, %v3117_v50  ;;  %v134_v14 = vsub.f32 %v3115_v45, %v133_v61  ;;  %v193_v15 = vand.u32 4294901760, %v3119_v51  ;;  %v200_v16 = vand.u32 4294901760, %v3121_v52 }
  0x11   :  { %v207_v17 = vand.u32 4294901760, %v3125_v54  ;;  %v214_v19 = vand.u32 4294901760, %v3132_v58  ;;  %v221_v20 = vand.u32 4294901760, %v3134_v59  ;;  %v228_v21 = vand.u32 4294901760, %v3136_v60 }
  0x12   :  { %2620 = vmatpush3.bf16.msra.mxu0 %v3077_v26  ;;  %v235_v22 = vand.u32 4294901760, %v3141_v63  ;;  %v242_v23 = vand.u32 4294901760, %v3145_v2  ;;  %v249_v27 = vand.u32 4294901760, %v3147_v3  ;;  %v3168_v28 = vpack.c.bf16 %v151_v41, %v144_v40 }
  0x13   :  { %2621 = vmatprep.subr.bf16.mxu0 %v2980_v0  ;;  %v3170_v29 = vpack.c.bf16 %v165_v6, %v158_v53  ;;  %v166_v30 = vsub.f32 %v3107_v42, %v165_v6  ;;  %v3174_v32 = vpack.c.bf16 %v179_v10, %v172_v7  ;;  %v3176_v34 = vpack.c.bf16 %v193_v15, %v186_v11 }
  0x14   :  { %v3178_v35 = vpack.c.bf16 %v207_v17, %v200_v16  ;;  %v3181_v36 = vpack.c.bf16 %v221_v20, %v214_v19  ;;  %v3183_v37 = vpack.c.bf16 %v235_v22, %v228_v21  ;;  %v3185_v39 = vpack.c.bf16 %v249_v27, %v242_v23 }
  0x15   :  { %v135_v40 = vand.u32 4294901760, %v134_v14  ;;  %v160_v41 = vand.u32 4294901760, %v159_v5  ;;  %v2634_v46 = vpack.c.bf16 %v153_v9, %v146_v8  ;;  %v167_v47 = vand.u32 4294901760, %v166_v30 }
  0x16   :  { %2623 = vmatpush3.bf16.msra.mxu0 %v3103_v38  ;;  %v173_v48 = vsub.f32 %v3109_v43, %v172_v7  ;;  %v180_v49 = vsub.f32 %v3111_v44, %v179_v10  ;;  %v187_v53 = vsub.f32 %v3117_v50, %v186_v11  ;;  %v194_v14 = vsub.f32 %v3119_v51, %v193_v15 }
  0x17   :  { %2624 = vmatprep.subr.bf16.mxu0 %v2980_v0  ;;  %v2637_v56 = vpack.c.bf16 %v167_v47, %v160_v41  ;;  %v201_v5 = vsub.f32 %v3121_v52, %v200_v16  ;;  %v208_v10 = vsub.f32 %v3125_v54, %v207_v17  ;;  %v215_v15 = vsub.f32 %v3132_v58, %v214_v19 }
  0x18   :  { %v174_v57 = vand.u32 4294901760, %v173_v48  ;;  %v181_v6 = vand.u32 4294901760, %v180_v49  ;;  %v188_v8 = vand.u32 4294901760, %v187_v53  ;;  %v195_v9 = vand.u32 4294901760, %v194_v14 }
  0x19   :  { %v202_v11 = vand.u32 4294901760, %v201_v5  ;;  %v222_v41 = vsub.f32 %v3134_v59, %v221_v20  ;;  %v229_v16 = vsub.f32 %v3136_v60, %v228_v21  ;;  %v216_v47 = vand.u32 4294901760, %v215_v15  ;;  %v3371_v5 = vld [vmem:[%s3683_s3 + $0x38] sm:$0xff] }
  0x1a   :  { %2626 = vmatpush3.bf16.msra.mxu0 %v3127_v55  ;;  %v2640_v7 = vpack.c.bf16 %v181_v6, %v174_v57  ;;  %v2643_v30 = vpack.c.bf16 %v195_v9, %v188_v8  ;;  %v236_v17 = vsub.f32 %v3141_v63, %v235_v22  ;;  %v243_v19 = vsub.f32 %v3145_v2, %v242_v23 }
  0x1b   :  { %2627 = vmatprep.subr.bf16.mxu0 %v2980_v0  ;;  %v223_v48 = vand.u32 4294901760, %v222_v41  ;;  %v230_v49 = vand.u32 4294901760, %v229_v16  ;;  %v250_v20 = vsub.f32 %v3147_v3, %v249_v27  ;;  %v2658_v14 = vpack.c.bf16 %v3074_v25, %v3072_v24 }
  0x1c   :  { %v244_v57 = vand.u32 4294901760, %v243_v19  ;;  %v2661_v23 = vpack.c.bf16 %v3107_v42, %v3091_v33  ;;  %v2664_v27 = vpack.c.bf16 %v3111_v44, %v3109_v43  ;;  %v2667_v24 = vpack.c.bf16 %v3119_v51, %v3117_v50 }
  0x1d   :  { %v2649_v53 = vpack.c.bf16 %v223_v48, %v216_v47  ;;  %v251_v6 = vand.u32 4294901760, %v250_v20  ;;  %v2670_v25 = vpack.c.bf16 %v3125_v54, %v3121_v52  ;;  %v2673_v33 = vpack.c.bf16 %v3134_v59, %v3132_v58  ;;  %v705_v47 = vld [vmem:[%s3683_s3 + $0x40] sm:$0xff]  ;;  %v706_v48 = vld [vmem:[%s3683_s3 + $0x48] sm:$0xff] }
  0x1e   :  { %2629 = vmatpush3.bf16.msra.mxu0 %v3139_v62  ;;  %v2676_v42 = vpack.c.bf16 %v3141_v63, %v3136_v60  ;;  %v2679_v43 = vpack.c.bf16 %v3147_v3, %v3145_v2 }
  0x1f   :  { %2630 = vmatprep.subr.bf16.mxu0 %v2980_v0  ;;  %v2655_v22 = vpack.c.bf16 %v251_v6, %v244_v57 }
  0x22   :  { %2632 = vmatpush3.bf16.msra.mxu0 %v3143_v1 }
  0x23   :  { %2633 = vmatprep.subr.bf16.mxu0 %v2980_v0 }
  0x25   :  { %2156 = vmatmul.mubr.f32.vlgmr.msra.gmra.mrb[0].mxu0 %v135_v40  ;;  %v209_v40 = vand.u32 4294901760, %v208_v10  ;;  %v742_v10 = vand.u32 4294901760, %v3371_v5 }
  0x26   :  { %2635 = vmatpush3.bf16.msra.mxu0 %v2634_v46  ;;  %2190 = vmatprep.mubr.msk.f32.mxu0 %vm2981_vm0, %v2982_v4 }
  0x27   :  { %2636 = vmatprep.subr.bf16.mxu0 %v2980_v0  ;;  %v2646_v46 = vpack.c.bf16 %v209_v40, %v202_v11  ;;  %v3382_v41 = vsub.f32 %v3371_v5, %v742_v10 }
  0x2a   :  { %2638 = vmatpush3.bf16.msra.mxu0 %v2637_v56  ;;  %v237_v56 = vand.u32 4294901760, %v236_v17 }
  0x2b   :  { %2639 = vmatprep.subr.bf16.mxu0 %v2980_v0 }
  0x2c   :  { %v2652_v21 = vpack.c.bf16 %v237_v56, %v230_v49  ;;  %v859_v49 = vand.u32 4294901760, %v3382_v41  ;;  %v748_v56 = vand.u32 4294901760, %v706_v48 }
  0x2e   :  { %2641 = vmatpush3.bf16.msra.mxu0 %v2640_v7  ;;  %v860_v57 = vsub.f32 %v3382_v41, %v859_v49 }
  0x2f   :  { %2642 = vmatprep.subr.bf16.mxu0 %v2980_v0 }
  0x32   :  { %2644 = vmatpush3.bf16.msra.mxu0 %v2643_v30 }
  0x33   :  { %2645 = vmatprep.subr.bf16.mxu0 %v2980_v0 }
  0x36   :  { %2647 = vmatpush3.bf16.msra.mxu0 %v2646_v46 }
  0x37   :  { %2648 = vmatprep.subr.bf16.mxu0 %v2980_v0 }
  0x3a   :  { %2650 = vmatpush3.bf16.msra.mxu0 %v2649_v53  ;;  %v745_v53 = vand.u32 4294901760, %v705_v47 }
  0x3b   :  { %2651 = vmatprep.subr.bf16.mxu0 %v2980_v0 }
  0x3c   :  { %v3405_v6 = vsub.f32 %v705_v47, %v745_v53  ;;  %v1883_v47 = vld [vmem:[%s3684_s2] ss:$0 sm:$0xff] }
  0x3e   :  { %2653 = vmatpush3.bf16.msra.mxu0 %v2652_v21 }
  0x3f   :  { %2654 = vmatprep.subr.bf16.mxu0 %v2980_v0 }
  0x42   :  { %2656 = vmatpush3.bf16.msra.mxu0 %v2655_v22  ;;  %v3407_v22 = vsub.f32 %v706_v48, %v748_v56 }
  0x43   :  { %2657 = vmatprep.subr.bf16.mxu0 %v2980_v0 }
  0x45   :  { %2191 = vmatmul.mubr.f32.vlgmr.msra.gmra.mrb[0].mxu0 %v3086_v31 }
  0x46   :  { %2659 = vmatpush3.bf16.msra.mxu0 %v2658_v14  ;;  %2225 = vmatprep.mubr.msk.f32.mxu0 %vm2981_vm0, %v2982_v4 }
  0x47   :  { %2660 = vmatprep.subr.bf16.mxu0 %v2980_v0 }
  0x4a   :  { %2662 = vmatpush3.bf16.msra.mxu0 %v2661_v23 }
  0x4b   :  { %2663 = vmatprep.subr.bf16.mxu0 %v2980_v0 }
  0x4e   :  { %2665 = vmatpush3.bf16.msra.mxu0 %v2664_v27  ;;  %v707_v27 = vld [vmem:[%s3683_s3 + $0x50] sm:$0xff] }
  0x4f   :  { %2666 = vmatprep.subr.bf16.mxu0 %v2980_v0 }
  0x52   :  { %2668 = vmatpush3.bf16.msra.mxu0 %v2667_v24  ;;  %v708_v24 = vld [vmem:[%s3683_s3 + $0x58] sm:$0xff] }
  0x53   :  { %2669 = vmatprep.subr.bf16.mxu0 %v2980_v0 }
  0x56   :  { %2671 = vmatpush3.bf16.msra.mxu0 %v2670_v25 }
  0x57   :  { %2672 = vmatprep.subr.bf16.mxu0 %v2980_v0 }
  0x5a   :  { %2674 = vmatpush3.bf16.msra.mxu0 %v2673_v33  ;;  %v861_v33 = vand.u32 4294901760, %v860_v57 }
  0x5b   :  { %2675 = vmatprep.subr.bf16.mxu0 %v2980_v0 }
  0x5e   :  { %2677 = vmatpush3.bf16.msra.mxu0 %v2676_v42  ;;  %v866_v42 = vand.u32 4294901760, %v3405_v6 }
  0x5f   :  { %2678 = vmatprep.subr.bf16.mxu0 %v2980_v0 }
  0x62   :  { %2680 = vmatpush3.bf16.msra.mxu0 %v2679_v43  ;;  %v873_v43 = vand.u32 4294901760, %v3407_v22 }
  0x63   :  { %2681 = vmatprep.subr.bf16.mxu0 %v2980_v0 }
  0x65   :  { %2226 = vmatmul.mubr.f32.vlgmr.msra.gmra.mrb[0].mxu0 %v3115_v45  ;;  %v3317_v45 = vld [vmem:[%s3683_s3 + $0x18] sm:$0xff] }
  0x66   :  { %2683 = vmatpush3.bf16.msra.mxu0 %v3047_v12  ;;  %2260 = vmatprep.mubr.msk.f32.mxu0 %vm2981_vm0, %v2982_v4  ;;  %v730_v54 = vand.u32 4294901760, %v3317_v45 }
  0x67   :  { %2684 = vmatprep.subr.bf16.mxu0 %v2980_v0 }
  0x68   :  { %v3335_v60 = vsub.f32 %v3317_v45, %v730_v54  ;;  %v867_v45 = vsub.f32 %v3405_v6, %v866_v42 }
  0x6a   :  { %2686 = vmatpush3.bf16.msra.mxu0 %v3050_v13  ;;  %v831_v3 = vand.u32 4294901760, %v3335_v60 }
  0x6b   :  { %2687 = vmatprep.subr.bf16.mxu0 %v2980_v0 }
  0x6e   :  { %2689 = vmatpush3.bf16.msra.mxu0 %v3060_v18 }
  0x6f   :  { %2690 = vmatprep.subr.bf16.mxu0 %v2980_v0 }
  0x72   :  { %2692 = vmatpush3.bf16.msra.mxu0 %v3077_v26 }
  0x73   :  { %2693 = vmatprep.subr.bf16.mxu0 %v2980_v0 }
  0x76   :  { %2695 = vmatpush3.bf16.msra.mxu0 %v3103_v38 }
  0x77   :  { %2696 = vmatprep.subr.bf16.mxu0 %v2980_v0 }
  0x7a   :  { %2698 = vmatpush3.bf16.msra.mxu0 %v3127_v55 }
  0x7b   :  { %2699 = vmatprep.subr.bf16.mxu0 %v2980_v0 }
  0x7e   :  { %2701 = vmatpush3.bf16.msra.mxu0 %v3139_v62 }
  0x7f   :  { %2702 = vmatprep.subr.bf16.mxu0 %v2980_v0 }
  0x82   :  { %2704 = vmatpush3.bf16.msra.mxu0 %v3143_v1 }
  0x83   :  { %2705 = vmatprep.subr.bf16.mxu0 %v2980_v0 }
  0x85   :  { %2261 = vmatmul.mubr.f32.vlgmr.msra.gmra.mrb[0].mxu0 %v133_v61  ;;  %v3340_v61 = vld [vmem:[%s3683_s3 + $0x20] sm:$0xff] }
  0x86   :  { %2707 = vmatpush3.bf16.msra.mxu0 %v3168_v28  ;;  %2295 = vmatprep.mubr.msk.f32.mxu0 %vm2981_vm0, %v2982_v4  ;;  %v733_v28 = vand.u32 4294901760, %v3340_v61 }
  0x87   :  { %2708 = vmatprep.subr.bf16.mxu0 %v2980_v0 }
  0x8a   :  { %2710 = vmatpush3.bf16.msra.mxu0 %v3170_v29 }
  0x8b   :  { %2711 = vmatprep.subr.bf16.mxu0 %v2980_v0 }
  0x8e   :  { %2713 = vmatpush3.bf16.msra.mxu0 %v3174_v32 }
  0x8f   :  { %2714 = vmatprep.subr.bf16.mxu0 %v2980_v0 }
  0x92   :  { %2716 = vmatpush3.bf16.msra.mxu0 %v3176_v34 }
  0x93   :  { %2717 = vmatprep.subr.bf16.mxu0 %v2980_v0 }
  0x96   :  { %2719 = vmatpush3.bf16.msra.mxu0 %v3178_v35  ;;  %v832_v35 = vsub.f32 %v3335_v60, %v831_v3 }
  0x97   :  { %2720 = vmatprep.subr.bf16.mxu0 %v2980_v0 }
  0x98   :  { %v833_v8 = vand.u32 4294901760, %v832_v35 }
  0x9a   :  { %2722 = vmatpush3.bf16.msra.mxu0 %v3181_v36  ;;  %v3358_v36 = vsub.f32 %v3340_v61, %v733_v28 }
  0x9b   :  { %2723 = vmatprep.subr.bf16.mxu0 %v2980_v0 }
  0x9c   :  { %v838_v11 = vand.u32 4294901760, %v3358_v36 }
  0x9e   :  { %2725 = vmatpush3.bf16.msra.mxu0 %v3183_v37  ;;  %v839_v16 = vsub.f32 %v3358_v36, %v838_v11 }
  0x9f   :  { %2726 = vmatprep.subr.bf16.mxu0 %v2980_v0 }
  0xa0   :  { %v840_v19 = vand.u32 4294901760, %v839_v16  ;;  %v2802_v16 = vpack.c.bf16 %v3407_v22, %v3405_v6  ;;  %v1321_v6 = vld [vmem:[%s3685_s5 + $0x30] sm:$0xff] }
  0xa2   :  { %2728 = vmatpush3.bf16.msra.mxu0 %v3185_v39  ;;  %v3366_v39 = vld [vmem:[%s3683_s3 + $0x30] sm:$0xff] }
  0xa3   :  { %2729 = vmatprep.subr.bf16.mxu0 %v2980_v0  ;;  %v739_v9 = vand.u32 4294901760, %v3366_v39 }
  0xa5   :  { %2296 = vmatmul.mubr.f32.vlgmr.msra.gmra.mrb[0].mxu0 %v3086_v31  ;;  %v3379_v15 = vsub.f32 %v3366_v39, %v739_v9  ;;  %v3450_v35 = vpack.c.bf16 %v742_v10, %v739_v9 }
  0xa6   :  { %2731 = vmatpush3.bf16.msra.mxu0 %v3047_v12  ;;  %2330 = vmatprep.mubr.msk.f32.mxu0 %vm2981_vm0, %v2982_v4  ;;  %v697_v12 = vld [vmem:[%s3683_s3] sm:$0xff] }
  0xa7   :  { %2732 = vmatprep.subr.bf16.mxu0 %v2980_v0  ;;  %v852_v17 = vand.u32 4294901760, %v3379_v15 }
  0xa9   :  { %v853_v21 = vsub.f32 %v3379_v15, %v852_v17 }
  0xaa   :  { %2734 = vmatpush3.bf16.msra.mxu0 %v3050_v13  ;;  %v698_v13 = vld [vmem:[%s3683_s3 + $0x8] sm:$0xff] }
  0xab   :  { %2735 = vmatprep.subr.bf16.mxu0 %v2980_v0  ;;  %v854_v25 = vand.u32 4294901760, %v853_v21 }
  0xae   :  { %2737 = vmatpush3.bf16.msra.mxu0 %v3060_v18  ;;  %v721_v18 = vand.u32 4294901760, %v697_v12 }
  0xaf   :  { %2738 = vmatprep.subr.bf16.mxu0 %v2980_v0 }
  0xb2   :  { %2740 = vmatpush3.bf16.msra.mxu0 %v3077_v26  ;;  %v724_v26 = vand.u32 4294901760, %v698_v13 }
  0xb3   :  { %2741 = vmatprep.subr.bf16.mxu0 %v2980_v0 }
  0xb4   :  { %v3307_v44 = vsub.f32 %v698_v13, %v724_v26  ;;  %v3409_v23 = vpack.c.bf16 %v724_v26, %v721_v18  ;;  %v754_v13 = vand.u32 4294901760, %v708_v24 }
  0xb6   :  { %2743 = vmatpush3.bf16.msra.mxu0 %v3103_v38  ;;  %v3305_v38 = vsub.f32 %v697_v12, %v721_v18  ;;  %v817_v51 = vand.u32 4294901760, %v3307_v44  ;;  %v751_v12 = vand.u32 4294901760, %v707_v27  ;;  %v2781_v18 = vpack.c.bf16 %v861_v33, %v854_v25 }
  0xb7   :  { %2744 = vmatprep.subr.bf16.mxu0 %v2980_v0  ;;  %v3434_v61 = vsub.f32 %v708_v24, %v754_v13 }
  0xb8   :  { %v810_v50 = vand.u32 4294901760, %v3305_v38  ;;  %v818_v58 = vsub.f32 %v3307_v44, %v817_v51  ;;  %v2790_v5 = vpack.c.bf16 %v3307_v44, %v3305_v38  ;;  %v3465_v9 = vpack.c.bf16 %v754_v13, %v751_v12 }
  0xb9   :  { %v2835_v44 = vpack.c.bf16 %v859_v49, %v852_v17 }
  0xba   :  { %2746 = vmatpush3.bf16.msra.mxu0 %v3127_v55  ;;  %v811_v55 = vsub.f32 %v3305_v38, %v810_v50  ;;  %v2826_v13 = vpack.c.bf16 %v817_v51, %v810_v50  ;;  %v2838_v50 = vpack.c.bf16 %v873_v43, %v866_v42 }
  0xbb   :  { %2747 = vmatprep.subr.bf16.mxu0 %v2980_v0 }
  0xbc   :  { %v812_v63 = vand.u32 4294901760, %v811_v55  ;;  %v874_v55 = vsub.f32 %v3407_v22, %v873_v43  ;;  %v1322_v22 = vld [vmem:[%s3685_s5 + $0x38] sm:$0xff] }
  0xbe   :  { %2749 = vmatpush3.bf16.msra.mxu0 %v3139_v62  ;;  %v3345_v62 = vld [vmem:[%s3683_s3 + $0x28] sm:$0xff] }
  0xbf   :  { %2750 = vmatprep.subr.bf16.mxu0 %v2980_v0  ;;  %v736_v29 = vand.u32 4294901760, %v3345_v62 }
  0xc1   :  { %v3361_v37 = vsub.f32 %v3345_v62, %v736_v29  ;;  %v868_v62 = vand.u32 4294901760, %v867_v45 }
  0xc2   :  { %2752 = vmatpush3.bf16.msra.mxu0 %v3143_v1  ;;  %v819_v1 = vand.u32 4294901760, %v818_v58  ;;  %v3432_v58 = vsub.f32 %v707_v27, %v751_v12 }
  0xc3   :  { %2753 = vmatprep.subr.bf16.mxu0 %v2980_v0  ;;  %v845_v30 = vand.u32 4294901760, %v3361_v37  ;;  %v2796_v10 = vpack.c.bf16 %v3361_v37, %v3358_v36 }
  0xc4   :  { %v2772_v32 = vpack.c.bf16 %v819_v1, %v812_v63  ;;  %v875_v63 = vand.u32 4294901760, %v874_v55 }
  0xc5   :  { %2331 = vmatmul.mubr.f32.vlgmr.msra.gmra.mrb[0].mxu0 %v3086_v31  ;;  %v3312_v31 = vld [vmem:[%s3683_s3 + $0x10] sm:$0xff]  ;;  %v846_v46 = vsub.f32 %v3361_v37, %v845_v30  ;;  %v2832_v38 = vpack.c.bf16 %v845_v30, %v838_v11  ;;  %v1318_v37 = vld [vmem:[%s3685_s5 + $0x18] sm:$0xff]  ;;  %v1319_v30 = vld [vmem:[%s3685_s5 + $0x20] sm:$0xff] }
  0xc6   :  { %2357 = vmatprep.mubr.msk.f32.mxu0 %vm2981_vm0, %v2982_v4  ;;  %v727_v52 = vand.u32 4294901760, %v3312_v31  ;;  %2773 = vmatpush3.bf16.msra.mxu1 %v2772_v32  ;;  %v2784_v1 = vpack.c.bf16 %v875_v63, %v868_v62  ;;  %v1347_v17 = vand.u32 4294901760, %v1319_v30  ;;  %v1353_v62 = vand.u32 4294901760, %v1321_v6 }
  0xc7   :  { %2774 = vmatprep.subr.bf16.mxu1 %v2980_v0  ;;  %v847_v20 = vand.u32 4294901760, %v846_v46  ;;  %2755 = vmatpush3.bf16.msra.mxu0 %v3409_v23  ;;  %v2805_v46 = vpack.c.bf16 %v3434_v61, %v3432_v58  ;;  %v1356_v63 = vand.u32 4294901760, %v1322_v22 }
  0xc8   :  { %v3332_v59 = vsub.f32 %v3312_v31, %v727_v52  ;;  %2756 = vmatprep.subr.bf16.mxu0 %v2980_v0  ;;  %v3424_v26 = vpack.c.bf16 %v730_v54, %v727_v52  ;;  %v3437_v31 = vpack.c.bf16 %v736_v29, %v733_v28  ;;  %v880_v52 = vand.u32 4294901760, %v3432_v58 }
  0xc9   :  { %v2778_v14 = vpack.c.bf16 %v847_v20, %v840_v19  ;;  %v887_v54 = vand.u32 4294901760, %v3434_v61  ;;  %v3589_v55 = vsub.f32 %v1319_v30, %v1347_v17 }
  0xca   :  { %v824_v2 = vand.u32 4294901760, %v3332_v59  ;;  %v881_v32 = vsub.f32 %v3432_v58, %v880_v52 }
  0xcb   :  { %2758 = vmatpush3.bf16.msra.mxu0 %v3424_v26  ;;  %v2841_v51 = vpack.c.bf16 %v887_v54, %v880_v52  ;;  %v3599_v52 = vsub.f32 %v1322_v22, %v1356_v63 }
  0xcc   :  { %v825_v34 = vsub.f32 %v3332_v59, %v824_v2  ;;  %2759 = vmatprep.subr.bf16.mxu0 %v2980_v0  ;;  %v882_v28 = vand.u32 4294901760, %v881_v32 }
  0xce   :  { %v826_v7 = vand.u32 4294901760, %v825_v34  ;;  %v888_v34 = vsub.f32 %v3434_v61, %v887_v54 }
  0xcf   :  { %2761 = vmatpush3.bf16.msra.mxu0 %v3437_v31 }
  0xd0   :  { %v2775_v40 = vpack.c.bf16 %v833_v8, %v826_v7  ;;  %v889_v29 = vand.u32 4294901760, %v888_v34  ;;  %2762 = vmatprep.subr.bf16.mxu0 %v2980_v0  ;;  %v3459_v7 = vpack.c.bf16 %v748_v56, %v745_v53  ;;  %v2793_v8 = vpack.c.bf16 %v3335_v60, %v3332_v59  ;;  %v1315_v59 = vld [vmem:[%s3685_s5] sm:$0xff]  ;;  %v1316_v60 = vld [vmem:[%s3685_s5 + $0x8] sm:$0xff] }
  0xd1   :  { %v1338_v36 = vand.u32 4294901760, %v1316_v60 }
  0xd2   :  { %2776 = vmatpush3.bf16.msra.mxu1 %v2775_v40  ;;  %v2787_v39 = vpack.c.bf16 %v889_v29, %v882_v28  ;;  %v2799_v40 = vpack.c.bf16 %v3382_v41, %v3379_v15  ;;  %v1320_v15 = vld [vmem:[%s3685_s5 + $0x28] sm:$0xff]  ;;  %v1344_v41 = vand.u32 4294901760, %v1318_v37 }
  0xd3   :  { %2777 = vmatprep.subr.bf16.mxu1 %v2980_v0  ;;  %2764 = vmatpush3.bf16.msra.mxu0 %v3450_v35  ;;  %v1350_v49 = vand.u32 4294901760, %v1320_v15  ;;  %v3583_v43 = vsub.f32 %v1316_v60, %v1338_v36 }
  0xd4   :  { %2765 = vmatprep.subr.bf16.mxu0 %v2980_v0  ;;  %v3587_v45 = vsub.f32 %v1318_v37, %v1344_v41 }
  0xd5   :  { %v3594_v61 = vsub.f32 %v1320_v15, %v1350_v49  ;;  %v3602_v54 = vpack.c.bf16 %v1350_v49, %v1347_v17  ;;  %v1427_v34 = vand.u32 4294901760, %v3583_v43 }
  0xd6   :  { %2779 = vmatpush3.bf16.msra.mxu1 %v2778_v14 }
  0xd7   :  { %2780 = vmatprep.subr.bf16.mxu1 %v2980_v0  ;;  %2767 = vmatpush3.bf16.msra.mxu0 %v3459_v7  ;;  %v1428_v29 = vsub.f32 %v3583_v43, %v1427_v34 }
  0xd8   :  { %2768 = vmatprep.subr.bf16.mxu0 %v2980_v0 }
  0xda   :  { %2782 = vmatpush3.bf16.msra.mxu1 %v2781_v18  ;;  %v2829_v18 = vpack.c.bf16 %v831_v3, %v824_v2  ;;  %v1317_v2 = vld [vmem:[%s3685_s5 + $0x10] sm:$0xff]  ;;  %v1335_v3 = vand.u32 4294901760, %v1315_v59 }
  0xdb   :  { %2783 = vmatprep.subr.bf16.mxu1 %v2980_v0  ;;  %2770 = vmatpush3.bf16.msra.mxu0 %v3465_v9  ;;  %v1341_v11 = vand.u32 4294901760, %v1317_v2 }
  0xdc   :  { %v3581_v42 = vsub.f32 %v1315_v59, %v1335_v3 }
  0xdd   :  { %v3592_v58 = vpack.c.bf16 %v1344_v41, %v1341_v11 }
  0xde   :  { %2785 = vmatpush3.bf16.msra.mxu1 %v2784_v1  ;;  %v3606_v1 = vpack.c.bf16 %v1356_v63, %v1353_v62  ;;  %v1420_v32 = vand.u32 4294901760, %v3581_v42 }
  0xdf   :  { %2786 = vmatprep.subr.bf16.mxu1 %v2980_v0 }
  0xe0   :  { %v1421_v28 = vsub.f32 %v3581_v42, %v1420_v32  ;;  %v2910_v59 = vpack.c.bf16 %v1427_v34, %v1420_v32 }
  0xe2   :  { %2788 = vmatpush3.bf16.msra.mxu1 %v2787_v39  ;;  %v1429_v39 = vand.u32 4294901760, %v1428_v29 }
  0xe3   :  { %2789 = vmatprep.subr.bf16.mxu1 %v2980_v0 }
 0x198   :  { %v687_v48 = vpop.f32.mrb[0].mxu0 }
 0x199   :  { %v2933_v53 = vadd.f32 %v1883_v47, %v687_v48  ;;  %v2332_v56 = vpop.f32.mrb[1].mxu0  ;;  %v1448_v48 = vand.u32 4294901760, %v3589_v55 }
 0x19b   :  { %v1884_v19 = vmul.f32 -1.442695, %v2933_v53  ;;  %v1455_v53 = vand.u32 4294901760, %v3594_v61 }
 0x19d   :  { %2968 = vpow2.f32 %v1884_v19  ;;  %v1449_v19 = vsub.f32 %v3589_v55, %v1448_v48 }
 0x1a7   :  { %v2969_v20 = vpop.eup %2968 }
 0x1a8   :  { %v694_v21 = vadd.f32 1.0, %v2969_v20  ;;  %v1456_v20 = vsub.f32 %v3594_v61, %v1455_v53 }
 0x1aa   :  { %2970 = vrcp.f32 %v694_v21  ;;  %v1450_v21 = vand.u32 4294901760, %v1449_v19 }
 0x1b4   :  { %v2971_v57 = vpop.eup %2970 }
 0x1b5   :  { %v718_v14 = vsel %vm716_vm1, %v2971_v57, 0 }
 0x1b6   :  { %v3479_v27 = vand.u32 4294901760, %v718_v14 }
 0x1b8   :  { %v798_v24 = vsub.f32 %v718_v14, %v3479_v27  ;;  %2385 = vmatmul.mubr.f32.vlgmr.msra.gmra.mrb[0].mxu1 %v3479_v27  ;;  %v1469_v14 = vand.u32 4294901760, %v3599_v52 }
 0x1b9   :  { %2791 = vmatpush3.bf16.msra.mxu1 %v2790_v5  ;;  %2411 = vmatprep.mubr.msk.f32.mxu1 %vm2981_vm0, %v2982_v4 }
 0x1ba   :  { %2792 = vmatprep.subr.bf16.mxu1 %v2980_v0  ;;  %v799_v25 = vand.u32 4294901760, %v798_v24 }
 0x1bc   :  { %v800_v33 = vsub.f32 %v798_v24, %v799_v25 }
 0x1bd   :  { %2794 = vmatpush3.bf16.msra.mxu1 %v2793_v8 }
 0x1be   :  { %2795 = vmatprep.subr.bf16.mxu1 %v2980_v0  ;;  %v801_v12 = vand.u32 4294901760, %v800_v33 }
 0x1c0   :  { %2358 = vmatmul.mubr.f32.vlgmr.msra.gmra.mrb[2].mxu0 %v801_v12 }
 0x1c1   :  { %2797 = vmatpush3.bf16.msra.mxu1 %v2796_v10 }
 0x1c2   :  { %2798 = vmatprep.subr.bf16.mxu1 %v2980_v0 }
 0x1c5   :  { %2800 = vmatpush3.bf16.msra.mxu1 %v2799_v40 }
 0x1c6   :  { %2801 = vmatprep.subr.bf16.mxu1 %v2980_v0 }
 0x1c9   :  { %2803 = vmatpush3.bf16.msra.mxu1 %v2802_v16 }
 0x1ca   :  { %2804 = vmatprep.subr.bf16.mxu1 %v2980_v0 }
 0x1cd   :  { %2806 = vmatpush3.bf16.msra.mxu1 %v2805_v46 }
 0x1ce   :  { %2807 = vmatprep.subr.bf16.mxu1 %v2980_v0 }
 0x1d0   :  { %2412 = vmatmul.mubr.f32.vlgmr.msra.gmra.mrb[0].mxu1 %v798_v24 }
 0x1d1   :  { %2809 = vmatpush3.bf16.msra.mxu1 %v3409_v23  ;;  %2438 = vmatprep.mubr.msk.f32.mxu1 %vm2981_vm0, %v2982_v4 }
 0x1d2   :  { %2810 = vmatprep.subr.bf16.mxu1 %v2980_v0 }
 0x1d5   :  { %2812 = vmatpush3.bf16.msra.mxu1 %v3424_v26 }
 0x1d6   :  { %2813 = vmatprep.subr.bf16.mxu1 %v2980_v0 }
 0x1d9   :  { %2815 = vmatpush3.bf16.msra.mxu1 %v3437_v31 }
 0x1da   :  { %2816 = vmatprep.subr.bf16.mxu1 %v2980_v0 }
 0x1dd   :  { %2818 = vmatpush3.bf16.msra.mxu1 %v3450_v35 }
 0x1de   :  { %2819 = vmatprep.subr.bf16.mxu1 %v2980_v0 }
 0x1e1   :  { %2821 = vmatpush3.bf16.msra.mxu1 %v3459_v7 }
 0x1e2   :  { %2822 = vmatprep.subr.bf16.mxu1 %v2980_v0 }
 0x1e5   :  { %2824 = vmatpush3.bf16.msra.mxu1 %v3465_v9 }
 0x1e6   :  { %2825 = vmatprep.subr.bf16.mxu1 %v2980_v0 }
 0x1e8   :  { %2439 = vmatmul.mubr.f32.vlgmr.msra.gmra.mrb[0].mxu1 %v799_v25  ;;  %v1470_v25 = vsub.f32 %v3599_v52, %v1469_v14 }
 0x1e9   :  { %2827 = vmatpush3.bf16.msra.mxu1 %v2826_v13  ;;  %2465 = vmatprep.mubr.msk.f32.mxu1 %vm2981_vm0, %v2982_v4 }
 0x1ea   :  { %2828 = vmatprep.subr.bf16.mxu1 %v2980_v0  ;;  %v1471_v13 = vand.u32 4294901760, %v1470_v25 }
 0x1ed   :  { %2830 = vmatpush3.bf16.msra.mxu1 %v2829_v18 }
 0x1ee   :  { %2831 = vmatprep.subr.bf16.mxu1 %v2980_v0 }
 0x1f1   :  { %2833 = vmatpush3.bf16.msra.mxu1 %v2832_v38  ;;  %v2886_v38 = vpack.c.bf16 %v3583_v43, %v3581_v42 }
 0x1f2   :  { %2834 = vmatprep.subr.bf16.mxu1 %v2980_v0 }
 0x1f5   :  { %2836 = vmatpush3.bf16.msra.mxu1 %v2835_v44 }
 0x1f6   :  { %2837 = vmatprep.subr.bf16.mxu1 %v2980_v0 }
 0x1f9   :  { %2839 = vmatpush3.bf16.msra.mxu1 %v2838_v50  ;;  %v2892_v50 = vpack.c.bf16 %v3594_v61, %v3589_v55 }
 0x1fa   :  { %2840 = vmatprep.subr.bf16.mxu1 %v2980_v0 }
 0x1fd   :  { %2842 = vmatpush3.bf16.msra.mxu1 %v2841_v51 }
 0x1fe   :  { %2843 = vmatprep.subr.bf16.mxu1 %v2980_v0 }
 0x200   :  { %2466 = vmatmul.mubr.f32.vlgmr.msra.gmra.mrb[0].mxu1 %v3479_v27 }
 0x201   :  { %2845 = vmatpush3.bf16.msra.mxu1 %v3409_v23  ;;  %2492 = vmatprep.mubr.msk.f32.mxu1 %vm2981_vm0, %v2982_v4  ;;  %v3579_v23 = vpack.c.bf16 %v1338_v36, %v1335_v3  ;;  %v1885_v36 = vld [vmem:[%s3686_s4] ss:$0 sm:$0xff] }
 0x202   :  { %2846 = vmatprep.subr.bf16.mxu1 %v2980_v0 }
 0x205   :  { %2848 = vmatpush3.bf16.msra.mxu1 %v3424_v26  ;;  %v3585_v26 = vsub.f32 %v1317_v2, %v1341_v11  ;;  %v2916_v2 = vpack.c.bf16 %v1455_v53, %v1448_v48 }
 0x206   :  { %2849 = vmatprep.subr.bf16.mxu1 %v2980_v0 }
 0x207   :  { %v1434_v5 = vand.u32 4294901760, %v3585_v26  ;;  %v2889_v44 = vpack.c.bf16 %v3587_v45, %v3585_v26 }
 0x209   :  { %2851 = vmatpush3.bf16.msra.mxu1 %v3437_v31  ;;  %v3597_v31 = vsub.f32 %v1321_v6, %v1353_v62 }
 0x20a   :  { %2852 = vmatprep.subr.bf16.mxu1 %v2980_v0 }
 0x20b   :  { %v1462_v57 = vand.u32 4294901760, %v3597_v31  ;;  %v2895_v51 = vpack.c.bf16 %v3599_v52, %v3597_v31 }
 0x20d   :  { %2854 = vmatpush3.bf16.msra.mxu1 %v3450_v35  ;;  %v1422_v35 = vand.u32 4294901760, %v1421_v28  ;;  %v1463_v24 = vsub.f32 %v3597_v31, %v1462_v57  ;;  %v2919_v3 = vpack.c.bf16 %v1469_v14, %v1462_v57 }
 0x20e   :  { %2855 = vmatprep.subr.bf16.mxu1 %v2980_v0 }
 0x20f   :  { %v2874_v8 = vpack.c.bf16 %v1429_v39, %v1422_v35  ;;  %v1464_v12 = vand.u32 4294901760, %v1463_v24 }
 0x211   :  { %2857 = vmatpush3.bf16.msra.mxu1 %v3459_v7  ;;  %v1441_v7 = vand.u32 4294901760, %v3587_v45  ;;  %v2883_v18 = vpack.c.bf16 %v1471_v13, %v1464_v12 }
 0x212   :  { %2858 = vmatprep.subr.bf16.mxu1 %v2980_v0 }
 0x213   :  { %v1442_v10 = vsub.f32 %v3587_v45, %v1441_v7  ;;  %v2913_v60 = vpack.c.bf16 %v1441_v7, %v1434_v5 }
 0x215   :  { %2860 = vmatpush3.bf16.msra.mxu1 %v3465_v9  ;;  %v1435_v9 = vsub.f32 %v3585_v26, %v1434_v5  ;;  %v1443_v47 = vand.u32 4294901760, %v1442_v10 }
 0x216   :  { %2861 = vmatprep.subr.bf16.mxu1 %v2980_v0 }
 0x217   :  { %v1436_v46 = vand.u32 4294901760, %v1435_v9 }
 0x218   :  { %2493 = vmatmul.mubr.f32.vlgmr.msra.gmra.mrb[0].mxu1 %v3479_v27  ;;  %v1457_v27 = vand.u32 4294901760, %v1456_v20 }
 0x219   :  { %2511 = vmatprep.mubr.msk.f32.mxu1 %vm2981_vm0, %v2982_v4  ;;  %2863 = vmatpush3.bf16.msra.mxu1 %v3579_v23  ;;  %v2877_v56 = vpack.c.bf16 %v1443_v47, %v1436_v46 }
 0x21a   :  { %2864 = vmatprep.subr.bf16.mxu1 %v2980_v0  ;;  %v2880_v33 = vpack.c.bf16 %v1457_v27, %v1450_v21 }
 0x21d   :  { %2866 = vmatpush3.bf16.msra.mxu1 %v3592_v58 }
 0x21e   :  { %2867 = vmatprep.subr.bf16.mxu1 %v2980_v0 }
 0x221   :  { %2869 = vmatpush3.bf16.msra.mxu1 %v3602_v54 }
 0x222   :  { %2870 = vmatprep.subr.bf16.mxu1 %v2980_v0 }
 0x225   :  { %2872 = vmatpush3.bf16.msra.mxu1 %v3606_v1 }
 0x226   :  { %2873 = vmatprep.subr.bf16.mxu1 %v2980_v0 }
 0x293   :  { %v803_v40 = vpop.f32.mrb[2].mxu0 }
 0x294   :  { %v2359_v16 = vpop.f32.mrb[3].mxu0  ;;  %v804_v37 = vadd.f32 %v1885_v36, %v803_v40 }
 0x2eb   :  { %v1305_v11 = vpop.f32.mrb[0].mxu1 }
 0x2ec   :  { %v2935_v30 = vadd.f32 %v1305_v11, %v804_v37  ;;  %v2494_v15 = vpop.f32.mrb[1].mxu1 }
 0x2ee   :  { %v1886_v41 = vmul.f32 -1.442695, %v2935_v30 }
 0x2f0   :  { %2972 = vpow2.f32 %v1886_v41 }
 0x2fa   :  { %v2973_v17 = vpop.eup %2972 }
 0x2fb   :  { %v1312_v49 = vadd.f32 1.0, %v2973_v17 }
 0x2fd   :  { %2974 = vrcp.f32 %v1312_v49 }
 0x307   :  { %v2975_v6 = vpop.eup %2974 }
 0x308   :  { %v1332_v22 = vsel %vm1330_vm2, %v2975_v6, 0 }
 0x309   :  { %v1407_v42 = vand.u32 4294901760, %v1332_v22 }
 0x30b   :  { %v1408_v43 = vsub.f32 %v1332_v22, %v1407_v42 }
 0x30d   :  { %v1409_v26 = vand.u32 4294901760, %v1408_v43 }
 0x30f   :  { %v1410_v45 = vsub.f32 %v1408_v43, %v1409_v26 }
 0x311   :  { %v1411_v55 = vand.u32 4294901760, %v1410_v45 }
 0x313   :  { %2512 = vmatmul.mubr.f32.vlgmr.msra.gmra.mrb[2].mxu1 %v1411_v55 }
 0x314   :  { %2875 = vmatpush3.bf16.msra.mxu1 %v2874_v8  ;;  %2530 = vmatprep.mubr.msk.f32.mxu1 %vm2981_vm0, %v2982_v4 }
 0x315   :  { %2876 = vmatprep.subr.bf16.mxu1 %v2980_v0 }
 0x318   :  { %2878 = vmatpush3.bf16.msra.mxu1 %v2877_v56 }
 0x319   :  { %2879 = vmatprep.subr.bf16.mxu1 %v2980_v0 }
 0x31c   :  { %2881 = vmatpush3.bf16.msra.mxu1 %v2880_v33 }
 0x31d   :  { %2882 = vmatprep.subr.bf16.mxu1 %v2980_v0 }
 0x320   :  { %2884 = vmatpush3.bf16.msra.mxu1 %v2883_v18 }
 0x321   :  { %2885 = vmatprep.subr.bf16.mxu1 %v2980_v0 }
 0x323   :  { %2531 = vmatmul.mubr.f32.vlgmr.msra.gmra.mrb[2].mxu1 %v1407_v42 }
 0x324   :  { %2887 = vmatpush3.bf16.msra.mxu1 %v2886_v38  ;;  %2549 = vmatprep.mubr.msk.f32.mxu1 %vm2981_vm0, %v2982_v4 }
 0x325   :  { %2888 = vmatprep.subr.bf16.mxu1 %v2980_v0 }
 0x328   :  { %2890 = vmatpush3.bf16.msra.mxu1 %v2889_v44 }
 0x329   :  { %2891 = vmatprep.subr.bf16.mxu1 %v2980_v0 }
 0x32c   :  { %2893 = vmatpush3.bf16.msra.mxu1 %v2892_v50 }
 0x32d   :  { %2894 = vmatprep.subr.bf16.mxu1 %v2980_v0 }
 0x330   :  { %2896 = vmatpush3.bf16.msra.mxu1 %v2895_v51 }
 0x331   :  { %2897 = vmatprep.subr.bf16.mxu1 %v2980_v0 }
 0x333   :  { %2550 = vmatmul.mubr.f32.vlgmr.msra.gmra.mrb[2].mxu1 %v1408_v43 }
 0x334   :  { %2899 = vmatpush3.bf16.msra.mxu1 %v3579_v23  ;;  %2568 = vmatprep.mubr.msk.f32.mxu1 %vm2981_vm0, %v2982_v4 }
 0x335   :  { %2900 = vmatprep.subr.bf16.mxu1 %v2980_v0 }
 0x338   :  { %2902 = vmatpush3.bf16.msra.mxu1 %v3592_v58 }
 0x339   :  { %2903 = vmatprep.subr.bf16.mxu1 %v2980_v0 }
 0x33c   :  { %2905 = vmatpush3.bf16.msra.mxu1 %v3602_v54 }
 0x33d   :  { %2906 = vmatprep.subr.bf16.mxu1 %v2980_v0 }
 0x340   :  { %2908 = vmatpush3.bf16.msra.mxu1 %v3606_v1 }
 0x341   :  { %2909 = vmatprep.subr.bf16.mxu1 %v2980_v0 }
 0x343   :  { %2569 = vmatmul.mubr.f32.vlgmr.msra.gmra.mrb[2].mxu1 %v1409_v26 }
 0x344   :  { %2911 = vmatpush3.bf16.msra.mxu1 %v2910_v59  ;;  %2587 = vmatprep.mubr.msk.f32.mxu1 %vm2981_vm0, %v2982_v4 }
 0x345   :  { %2912 = vmatprep.subr.bf16.mxu1 %v2980_v0 }
 0x348   :  { %2914 = vmatpush3.bf16.msra.mxu1 %v2913_v60 }
 0x349   :  { %2915 = vmatprep.subr.bf16.mxu1 %v2980_v0 }
 0x34c   :  { %2917 = vmatpush3.bf16.msra.mxu1 %v2916_v2 }
 0x34d   :  { %2918 = vmatprep.subr.bf16.mxu1 %v2980_v0 }
 0x350   :  { %2920 = vmatpush3.bf16.msra.mxu1 %v2919_v3 }
 0x351   :  { %2921 = vmatprep.subr.bf16.mxu1 %v2980_v0 }
 0x353   :  { %2588 = vmatmul.mubr.f32.vlgmr.msra.gmra.mrb[2].mxu1 %v1407_v42 }
 0x354   :  { %2923 = vmatpush3.bf16.msra.mxu1 %v3579_v23  ;;  %2606 = vmatprep.mubr.msk.f32.mxu1 %vm2981_vm0, %v2982_v4  ;;  %v1887_v23 = vld [vmem:[%s3687_s6] ss:$0 sm:$0xff] }
 0x355   :  { %2924 = vmatprep.subr.bf16.mxu1 %v2980_v0 }
 0x358   :  { %2926 = vmatpush3.bf16.msra.mxu1 %v3592_v58 }
 0x359   :  { %2927 = vmatprep.subr.bf16.mxu1 %v2980_v0 }
 0x35c   :  { %2929 = vmatpush3.bf16.msra.mxu1 %v3602_v54 }
 0x35d   :  { %2930 = vmatprep.subr.bf16.mxu1 %v2980_v0 }
 0x360   :  { %2932 = vmatpush3.bf16.msra.mxu1 %v3606_v1 }
 0x363   :  { %2607 = vmatmul.mubr.f32.vlgmr.msra.gmra.mrb[2].mxu1 %v1407_v42 }
 0x436   :  { %v1867_v61 = vpop.f32.mrb[2].mxu1 }
 0x437   :  { %v2936_v62 = vadd.f32 %v1887_v23, %v1867_v61  ;;  %v2608_v4 = vpop.f32.mrb[3].mxu1 }
 0x439   :  { %v1888_v63 = vmul.f32 -1.442695, %v2936_v62 }
 0x43b   :  { %2976 = vpow2.f32 %v1888_v63 }
 0x445   :  { %v2977_v31 = vpop.eup %2976 }
 0x446   :  { %v1874_v58 = vadd.f32 1.0, %v2977_v31 }
 0x448   :  { %2978 = vrcp.f32 %v1874_v58 }
 0x452   :  { %v2979_v52 = vpop.eup %2978 }
 0x453   :  { %1878 = vst.msk [vmem:[%s3688_s7] sm:$0xff] %vm1877_vm3, %v2979_v52 }

</bundles_post_ra>
